<compile_context>
chip_gen: v5e
topology: v5e:2x2
jax: 0.10.0
libtpu: 0.0.40
codegen_flags: <defaults>
</compile_context>

<pallas_src>
import functools

import jax
import jax.numpy as jnp
from jax.experimental import pallas as pl
from jax.experimental.pallas import tpu as pltpu

LN_EPS = 1e-5  # PyTorch nn.LayerNorm default eps


# ---------------------------------------------------------------------------
# Kernels
# ---------------------------------------------------------------------------
def _ln_relu(y, gamma_row, beta_row):
    mu = jnp.mean(y, axis=-1, keepdims=True)
    var = jnp.mean((y - mu) ** 2, axis=-1, keepdims=True)
    return jnp.maximum((y - mu) * jax.lax.rsqrt(var + LN_EPS) * gamma_row + beta_row, 0.0)


def _variance_kernel(mode, seq_len, mm_dtype, *refs):
    """Fused BasePredictor (+ optional bucketize / embedding lookup / residual add).

    mode:
      "predict"          refs = (x, w, vec, epo_out)
      "regulate_pred"    refs = (x, w, vec, emb, out, epo_out)      bucketize the prediction
      "regulate_target"  refs = (x, src, w, vec, emb, out, epo_out) bucketize the target
    x is the batch-folded (B*T, D) input; seq_len == T masks the conv shifts at sequence
    boundaries so the fold does not leak across sequences.
    """
    if mode == "regulate_target":
        x_ref, src_ref, w_ref, vec_ref, emb_ref, out_ref, epo_ref = refs
    elif mode == "regulate_pred":
        x_ref, w_ref, vec_ref, emb_ref, out_ref, epo_ref = refs
    else:  # "predict"
        x_ref, w_ref, vec_ref, epo_ref = refs

    x = x_ref[...].astype(jnp.float32)                         # (N, D)
    n, d = x.shape
    f = w_ref.shape[2]

    # Sequence-boundary masks for the batch-folded rows (hoisted, reused by both convs).
    rid = jax.lax.broadcasted_iota(jnp.int32, (n, 1), 0)
    pos = rid % seq_len
    is_first = pos == 0
    is_last = pos == (seq_len - 1)

    def conv_ln_relu(h, w_taps, b_row, g_row, be_row):
        # 3-tap "same" Conv1d as ONE matmul: concat(x[t-1], x[t], x[t+1]) @ (3*Cin, Cout).
        h_prev = jnp.where(is_first, 0.0, jnp.roll(h, 1, axis=0))
        h_next = jnp.where(is_last, 0.0, jnp.roll(h, -1, axis=0))
        hc = jnp.concatenate([h_prev, h, h_next], axis=-1)      # (N, 3*Cin)
        y = jnp.dot(hc.astype(mm_dtype), w_taps.astype(mm_dtype),
                    preferred_element_type=jnp.float32) + b_row
        return _ln_relu(y, g_row, be_row)

    h = conv_ln_relu(x, w_ref[0][: 3 * d, :],
                     vec_ref[0:1, :f], vec_ref[1:2, :f], vec_ref[2:3, :f])
    h = conv_ln_relu(h, w_ref[1][: 3 * f, :],
                     vec_ref[3:4, :f], vec_ref[4:5, :f], vec_ref[5:6, :f])

    wl_row = vec_ref[6:7, :f]                                   # (1, F)
    bl = vec_ref[7:8, 0:1]                                      # (1, 1)

    # Lane-dense predictor output: a (1, N) row (time on lanes) -> unmasked store.
    epo_row = jnp.maximum(
        jnp.einsum("of,nf->on", wl_row.astype(mm_dtype), h.astype(mm_dtype),
                   preferred_element_type=jnp.float32) + bl, 0.0)
    epo_ref[...] = epo_row.astype(epo_ref.dtype)

    if mode == "predict":
        return

    if mode == "regulate_target":
        src = src_ref[...].astype(jnp.float32)                  # (N, 1)
    else:
        # Column form of the same prediction, used as the bucketize source (boundaries were
        # pre-transformed with log1p(bnd / alpha) wrapper-side, so no expm1 / alpha in-kernel).
        src = jnp.maximum(
            jnp.einsum("nf,of->no", h.astype(mm_dtype), wl_row.astype(mm_dtype),
                       preferred_element_type=jnp.float32) + bl, 0.0)  # (N, 1)

    # Fused bucketize + one-hot: bucket v  <=>  lower[v] < e <= upper[v]  (right=False).
    v = emb_ref.shape[0]
    lower = vec_ref[8:9, :v]                                    # (1, V)
    upper = vec_ref[9:10, :v]                                   # (1, V)
    onehot = ((lower < src) & (src <= upper)).astype(mm_dtype)  # (N, V)
    emb = jnp.dot(onehot, emb_ref[...].astype(mm_dtype),
                  preferred_element_type=jnp.float32)           # (N, D)
    out_ref[...] = (x + emb).astype(out_ref.dtype)


def _length_regulate_kernel(mm_dtype, x_ref, start_ref, end_ref, out_ref):
    """LengthRegulator.LR with target durations: out[t] = sum_j [start_j <= t < end_j] * x[j]."""
    l = x_ref.shape[1]
    t_mel = out_ref.shape[1]
    t = jax.lax.broadcasted_iota(jnp.int32, (t_mel, l), 0)
    starts = start_ref[0]                                       # (1, L)
    ends = end_ref[0]                                           # (1, L)
    align = ((t >= starts) & (t < ends)).astype(mm_dtype)       # (T_mel, L)
    out_ref[0] = jnp.dot(align, x_ref[0].astype(mm_dtype),
                         preferred_element_type=jnp.float32).astype(out_ref.dtype)


# ---------------------------------------------------------------------------
# Wrappers (parameter packing + pallas_call)
# ---------------------------------------------------------------------------
_VMEM = pl.BlockSpec(memory_space=pltpu.MemorySpace.VMEM)
# v7x note: whole-array VMEM residency is ~1.5 MiB at these shapes; for large B*T, tile the
# row axis instead and keep 2x(in+out) tiles well under the 32 MiB scoped / 64 MiB physical VMEM.
_CPARAMS = pltpu.CompilerParams(vmem_limit_bytes=32 * 1024 * 1024)


def _pack_predictor_params(q, num_buckets=0, lower=None, upper=None):
    """Pack the 12 tiny parameters into 2 slabs (+ the (V, D) embedding table stays as-is)."""
    d, f = q["w1"].shape[1], q["w1"].shape[2]
    kmax = 3 * max(d, f)
    c = max(f, num_buckets)
    w = jnp.zeros((2, kmax, f), jnp.float32)
    w = w.at[0, : 3 * d, :].set(q["w1"].reshape(3 * d, f))
    w = w.at[1, : 3 * f, :].set(q["w2"].reshape(3 * f, f))
    vec = jnp.zeros((10, c), jnp.float32)
    vec = vec.at[0, :f].set(q["b1"])
    vec = vec.at[1, :f].set(q["g1"])
    vec = vec.at[2, :f].set(q["be1"])
    vec = vec.at[3, :f].set(q["b2"])
    vec = vec.at[4, :f].set(q["g2"])
    vec = vec.at[5, :f].set(q["be2"])
    vec = vec.at[6, :f].set(q["wl"])
    vec = vec.at[7, 0].set(q["bl"])
    if lower is not None:
        vec = vec.at[8, :num_buckets].set(lower)
        vec = vec.at[9, :num_buckets].set(upper)
    return w, vec


def _bucket_bounds(bnd, alpha=None):
    """(lower, upper] interval bounds reproducing torch.bucketize(v, bnd, right=False).

    If alpha is given, boundaries are pre-transformed with log1p(bnd / alpha) so the kernel can
    bucketize the raw predictor output p instead of expm1(p) * alpha (strictly monotone map,
    requires alpha > 0).  This keeps both expm1 and alpha out of the compiled kernel.
    """
    b = jnp.asarray(bnd, jnp.float32)
    if alpha is not None:
        b = jnp.log1p(jnp.maximum(b / alpha, -1.0))   # -> -inf where bnd <= -alpha
    inf = jnp.asarray([jnp.inf], jnp.float32)
    return jnp.concatenate([-inf, b]), jnp.concatenate([b, inf])


def base_predictor(x, q, matmul_dtype=jnp.float32):
    """BasePredictor.forward (training mode): (B, T, D) -> (B, T)."""
    b, t, d = x.shape
    w_slab, vec_slab = _pack_predictor_params(q)
    epo = pl.pallas_call(
        functools.partial(_variance_kernel, "predict", t, matmul_dtype),
        out_shape=jax.ShapeDtypeStruct((1, b * t), jnp.float32),
        in_specs=[_VMEM] * 3,
        out_specs=_VMEM,
        compiler_params=_CPARAMS,
    )(x.reshape(b * t, d), w_slab, vec_slab)
    return epo.reshape(b, t)


def variance_regulate(x, q, target=None, alpha=1.0, matmul_dtype=jnp.float32):
    """Pitch/EnergyRegulator.forward: returns (x + embedding[bucket], predictor_output)."""
    b, t, d = x.shape
    v = q["emb"].shape[0]
    lower, upper = _bucket_bounds(q["bnd"], None if target is not None else alpha)
    w_slab, vec_slab = _pack_predictor_params(q, v, lower, upper)

    args = [x.reshape(b * t, d)]
    if target is not None:
        args.append(target.reshape(b * t, 1).astype(jnp.float32))
    args += [w_slab, vec_slab, q["emb"]]
    mode = "regulate_target" if target is not None else "regulate_pred"

    out, epo = pl.pallas_call(
        functools.partial(_variance_kernel, mode, t, matmul_dtype),
        out_shape=(jax.ShapeDtypeStruct((b * t, d), x.dtype),
                   jax.ShapeDtypeStruct((1, b * t), jnp.float32)),
        in_specs=[_VMEM] * len(args),
        out_specs=(_VMEM, _VMEM),
        compiler_params=_CPARAMS,
    )(*args)
    return out.reshape(b, t, d), epo.reshape(b, t)


def length_regulate(x, durations, mel_max_length, matmul_dtype=jnp.float32):
    """LengthRegulator.LR with target durations (alignment @ x), padded to mel_max_length."""
    b, l, d = x.shape
    dur = durations.astype(jnp.int32)
    ends = jnp.cumsum(dur, axis=-1)
    starts = ends - dur
    return pl.pallas_call(
        functools.partial(_length_regulate_kernel, matmul_dtype),
        out_shape=jax.ShapeDtypeStruct((b, mel_max_length, d), x.dtype),
        grid=(b,),
        in_specs=[pl.BlockSpec((1, l, d), lambda i: (i, 0, 0)),
                  pl.BlockSpec((1, 1, l), lambda i: (i, 0, 0)),
                  pl.BlockSpec((1, 1, l), lambda i: (i, 0, 0))],
        out_specs=pl.BlockSpec((1, mel_max_length, d), lambda i: (i, 0, 0)),
        compiler_params=pltpu.CompilerParams(dimension_semantics=("parallel",)),
    )(x, starts.reshape(b, 1, l), ends.reshape(b, 1, l))


def variance_adapter(x, length_target, pitch_target, energy_target, params,
                     length_alpha=1.0, pitch_alpha=1.0, energy_alpha=1.0,
                     mel_max_length=None, matmul_dtype=jnp.float32):
    """VarianceAdapter.forward (training path: all three targets provided)."""
    # length_alpha / pitch_alpha / energy_alpha are only used by the module when the
    # corresponding target is None; with targets provided they are ignored (same as torch).
    if mel_max_length is None:
        raise ValueError("mel_max_length must be given (static output length).")
    dur_pred = base_predictor(x, params["duration"], matmul_dtype)
    x = length_regulate(x, length_target, mel_max_length, matmul_dtype)
    x, pitch_pred = variance_regulate(x, params["pitch"], pitch_target, pitch_alpha,
                                      matmul_dtype)
    x, energy_pred = variance_regulate(x, params["energy"], energy_target, energy_alpha,
                                       matmul_dtype)
    return x, dur_pred, pitch_pred, energy_pred


# ---------------------------------------------------------------------------
# Pure-JAX reference (mirrors the PyTorch module, dropout = identity)
# ---------------------------------------------------------------------------
def _ref_predictor(x, q):
    prec = jax.lax.Precision.HIGHEST
    def conv3(h, w, bias):
        hp = jnp.pad(h, ((0, 0), (1, 1), (0, 0)))
        y = sum(jnp.einsum("btc,cf->btf", hp[:, k:k + h.shape[1]], w[k], precision=prec)
                for k in range(3))
        return y + bias
    def lnrelu(h, g, bias):
        mu = h.mean(-1, keepdims=True)
        var = ((h - mu) ** 2).mean(-1, keepdims=True)
        return jnp.maximum((h - mu) * jax.lax.rsqrt(var + LN_EPS) * g + bias, 0.0)
    h = lnrelu(conv3(x, q["w1"], q["b1"]), q["g1"], q["be1"])
    h = lnrelu(conv3(h, q["w2"], q["b2"]), q["g2"], q["be2"])
    return jnp.maximum(jnp.einsum("btf,f->bt", h, q["wl"], precision=prec) + q["bl"], 0.0)


def _ref_regulate(x, q, target=None, alpha=1.0):
    pred = _ref_predictor(x, q)
    val = target if target is not None else jnp.expm1(pred) * alpha
    idx = jnp.sum(q["bnd"][None, None, :] < val[..., None], axis=-1)
    return x + q["emb"][idx], pred


def _ref_length_regulate(x, dur, mel_max_length):
    dur = dur.astype(jnp.int32)
    ends = jnp.cumsum(dur, axis=-1)
    starts = ends - dur
    t = jnp.arange(mel_max_length)[None, :, None]
    align = ((t >= starts[:, None, :]) & (t < ends[:, None, :])).astype(x.dtype)
    return jnp.einsum("btl,bld->btd", align, x, precision=jax.lax.Precision.HIGHEST)


def _ref_variance_adapter(x, length_t, pitch_t, energy_t, params, mel_max_length):
    dpred = _ref_predictor(x, params["duration"])
    x = _ref_length_regulate(x, length_t, mel_max_length)
    x, ppred = _ref_regulate(x, params["pitch"], pitch_t)
    x, epred = _ref_regulate(x, params["energy"], energy_t)
    return x, dpred, ppred, epred


# ---------------------------------------------------------------------------
# Demo / self-check
# ---------------------------------------------------------------------------
def make_predictor_params(key, d, f, vocab=None, vmin=None, vmax=None):
    """Parameters in module layout; conv weight tap k == torch Conv1d weight[:, :, k].T."""
    ks = jax.random.split(key, 11)
    q = {
        "w1": 0.1 * jax.random.normal(ks[0], (3, d, f), jnp.float32),
        "b1": 0.1 * jax.random.normal(ks[1], (f,), jnp.float32),
        "g1": 1.0 + 0.1 * jax.random.normal(ks[2], (f,), jnp.float32),
        "be1": 0.1 * jax.random.normal(ks[3], (f,), jnp.float32),
        "w2": 0.1 * jax.random.normal(ks[4], (3, f, f), jnp.float32),
        "b2": 0.1 * jax.random.normal(ks[5], (f,), jnp.float32),
        "g2": 1.0 + 0.1 * jax.random.normal(ks[6], (f,), jnp.float32),
        "be2": 0.1 * jax.random.normal(ks[7], (f,), jnp.float32),
        "wl": 0.1 * jax.random.normal(ks[8], (f,), jnp.float32),
        "bl": 0.1 * jax.random.normal(ks[9], (), jnp.float32),
    }
    if vocab is not None:
        q["bnd"] = jnp.linspace(vmin, vmax, vocab - 1, dtype=jnp.float32)
        q["emb"] = jax.random.normal(ks[10], (vocab, d), jnp.float32)
    return q


if __name__ == "__main__":
    # model_config (synthetic): encoder_dim=128, duration_predictor_filter_size=128,
    # duration_predictor_kernel_size=3, dropout=0.0, pitch/energy vocab=32.
    B, L, D, F = 2, 16, 128, 128          # batch, phoneme length, encoder_dim, filter_size
    V = 32                                # pitch/energy vocab
    T_MEL = 64                            # mel_max_length (>= max total duration = 4*L)

    root = jax.random.PRNGKey(0)
    kd, kp, ke, kx, kl, kpt, ket = jax.random.split(root, 7)
    params = {
        "duration": make_predictor_params(kd, D, F),
        "pitch": make_predictor_params(kp, D, F, vocab=V, vmin=0.0, vmax=6.0),
        "energy": make_predictor_params(ke, D, F, vocab=V, vmin=0.0, vmax=4.0),
    }
    x = jax.random.normal(kx, (B, L, D), jnp.float32)
    length_target = jax.random.randint(kl, (B, L), 1, 5).astype(jnp.int32)      # sums <= 64
    pitch_target = jax.random.uniform(kpt, (B, T_MEL), jnp.float32, -1.0, 7.0)
    energy_target = jax.random.uniform(ket, (B, T_MEL), jnp.float32, -0.5, 4.5)

    out, dpred, ppred, epred = jax.block_until_ready(
        variance_adapter(x, length_target, pitch_target, energy_target, params,
                         mel_max_length=T_MEL))

    r_out, r_d, r_p, r_e = _ref_variance_adapter(
        x, length_target, pitch_target, energy_target, params, T_MEL)

    assert out.shape == (B, T_MEL, D) and dpred.shape == (B, L)
    assert ppred.shape == (B, T_MEL) and epred.shape == (B, T_MEL)
    _close = lambda a, b: bool(jnp.allclose(a, b, atol=1e-3, rtol=1e-3))
    assert _close(out, r_out), "adapter output mismatch"
    assert _close(dpred, r_d), "duration predictor mismatch"
    assert _close(ppred, r_p), "pitch predictor mismatch"
    assert _close(epred, r_e), "energy predictor mismatch"

    # No-target (inference-style) regulator path: energy = expm1(pred) * alpha.
    out_nt, epo_nt = jax.block_until_ready(
        variance_regulate(x, params["energy"], target=None, alpha=1.3))
    r_out_nt, r_epo_nt = _ref_regulate(x, params["energy"], None, 1.3)
    assert _close(out_nt, r_out_nt) and _close(epo_nt, r_epo_nt), "no-target path mismatch"

    print("KERNEL_OK")
</pallas_src>

<mosaic_0001>
module attributes {stable_mosaic.version = 11 : i64} {
  func.func @_variance_kernel(%arg0: memref<32x128xf32, #tpu.memory_space<vmem>>, %arg1: memref<2x384x128xf32, #tpu.memory_space<vmem>>, %arg2: memref<10x128xf32, #tpu.memory_space<vmem>>, %arg3: memref<1x32xf32, #tpu.memory_space<vmem>>) attributes {dimension_semantics = [], scalar_prefetch = 0 : i64, scratch_operands = 0 : i64, tpu.core_type = #tpu.core_type<tc>} {
    %c0 = arith.constant 0 : index
    %c0_0 = arith.constant 0 : index
    %0 = vector.load %arg0[%c0, %c0_0] : memref<32x128xf32, #tpu.memory_space<vmem>>, vector<32x128xf32>
    %1 = tpu.iota {dimensions = array<i32: 0>} : vector<32x1xi32>
    %c16_i32 = arith.constant 16 : i32
    %c0_i32 = arith.constant 0 : i32
    %2 = arith.cmpi eq, %c16_i32, %c0_i32 : i32
    %c1_i32 = arith.constant 1 : i32
    %3 = arith.select %2, %c1_i32, %c16_i32 : i32
    %4 = vector.broadcast %3 : i32 to vector<32x1xi32>
    %5 = arith.remsi %1, %4 : vector<32x1xi32>
    %c0_i32_1 = arith.constant 0 : i32
    %6 = vector.broadcast %c0_i32_1 : i32 to vector<32x1xi32>
    %7 = arith.cmpi ne, %5, %6 : vector<32x1xi32>
    %c0_i32_2 = arith.constant 0 : i32
    %8 = vector.broadcast %c0_i32_2 : i32 to vector<32x1xi32>
    %9 = arith.cmpi slt, %5, %8 : vector<32x1xi32>
    %c0_i32_3 = arith.constant 0 : i32
    %10 = arith.cmpi slt, %3, %c0_i32_3 : i32
    %11 = vector.broadcast %10 : i1 to vector<32x1xi1>
    %12 = vector.broadcast %11 : vector<32x1xi1> to vector<32x1xi1>
    %13 = arith.xori %9, %12 : vector<32x1xi1>
    %14 = arith.andi %13, %7 : vector<32x1xi1>
    %15 = vector.broadcast %3 : i32 to vector<32x1xi32>
    %16 = arith.addi %5, %15 : vector<32x1xi32>
    %17 = arith.select %14, %16, %5 : vector<32x1xi1>, vector<32x1xi32>
    %c0_i32_4 = arith.constant 0 : i32
    %18 = vector.broadcast %c0_i32_4 : i32 to vector<32x1xi32>
    %19 = arith.cmpi eq, %17, %18 : vector<32x1xi32>
    %c15_i32 = arith.constant 15 : i32
    %20 = vector.broadcast %c15_i32 : i32 to vector<32x1xi32>
    %21 = arith.cmpi eq, %17, %20 : vector<32x1xi32>
    %c0_5 = arith.constant 0 : index
    %c0_6 = arith.constant 0 : index
    %c0_7 = arith.constant 0 : index
    %22 = vector.load %arg1[%c0_5, %c0_6, %c0_7] : memref<2x384x128xf32, #tpu.memory_space<vmem>>, vector<1x384x128xf32>
    %23 = vector.shape_cast %22 : vector<1x384x128xf32> to vector<384x128xf32>
    %c0_8 = arith.constant 0 : index
    %c0_9 = arith.constant 0 : index
    %24 = vector.load %arg2[%c0_8, %c0_9] : memref<10x128xf32, #tpu.memory_space<vmem>>, vector<1x128xf32>
    %c1 = arith.constant 1 : index
    %c0_10 = arith.constant 0 : index
    %25 = vector.load %arg2[%c1, %c0_10] : memref<10x128xf32, #tpu.memory_space<vmem>>, vector<1x128xf32>
    %c2 = arith.constant 2 : index
    %c0_11 = arith.constant 0 : index
    %26 = vector.load %arg2[%c2, %c0_11] : memref<10x128xf32, #tpu.memory_space<vmem>>, vector<1x128xf32>
    %27 = vector.extract_strided_slice %0 {offsets = [31, 0], sizes = [1, 128], strides = [1, 1]} : vector<32x128xf32> to vector<1x128xf32>
    %28 = vector.extract_strided_slice %0 {offsets = [0, 0], sizes = [31, 128], strides = [1, 1]} : vector<32x128xf32> to vector<31x128xf32>
    %29 = tpu.concatenate %27, %28 in 0 : vector<1x128xf32>, vector<31x128xf32> -> vector<32x128xf32>
    %cst = arith.constant 0.000000e+00 : f32
    %30 = vector.shape_cast %19 : vector<32x1xi1> to vector<32x1xi1>
    %31 = vector.broadcast %30 : vector<32x1xi1> to vector<32x128xi1>
    %32 = vector.broadcast %cst : f32 to vector<32x128xf32>
    %33 = arith.select %31, %32, %29 : vector<32x128xi1>, vector<32x128xf32>
    %34 = vector.extract_strided_slice %0 {offsets = [1, 0], sizes = [31, 128], strides = [1, 1]} : vector<32x128xf32> to vector<31x128xf32>
    %35 = vector.extract_strided_slice %0 {offsets = [0, 0], sizes = [1, 128], strides = [1, 1]} : vector<32x128xf32> to vector<1x128xf32>
    %36 = tpu.concatenate %34, %35 in 0 : vector<31x128xf32>, vector<1x128xf32> -> vector<32x128xf32>
    %cst_12 = arith.constant 0.000000e+00 : f32
    %37 = vector.shape_cast %21 : vector<32x1xi1> to vector<32x1xi1>
    %38 = vector.broadcast %37 : vector<32x1xi1> to vector<32x128xi1>
    %39 = vector.broadcast %cst_12 : f32 to vector<32x128xf32>
    %40 = arith.select %38, %39, %36 : vector<32x128xi1>, vector<32x128xf32>
    %41 = tpu.concatenate %33, %0, %40 in 1 : vector<32x128xf32>, vector<32x128xf32>, vector<32x128xf32> -> vector<32x384xf32>
    %cst_13 = arith.constant dense<0.000000e+00> : vector<32x128xf32>
    %42 = tpu.matmul %41, %23, %cst_13 {dimension_numbers = #tpu.dot_dimension_numbers<[1], [0], [0], [1], [0, 0, 1, 1], [], []>} : vector<32x384xf32>, vector<384x128xf32>, vector<32x128xf32> -> vector<32x128xf32>
    %43 = vector.broadcast %24 : vector<1x128xf32> to vector<32x128xf32>
    %44 = arith.addf %42, %43 : vector<32x128xf32>
    %cst_14 = arith.constant dense<0.000000e+00> : vector<32xf32>
    %45 = vector.multi_reduction <add>, %44, %cst_14 [1] : vector<32x128xf32> to vector<32xf32>
    %46 = vector.shape_cast %45 : vector<32xf32> to vector<32x1xf32>
    %cst_15 = arith.constant 1.280000e+02 : f32
    %47 = vector.broadcast %cst_15 : f32 to vector<32x1xf32>
    %48 = arith.divf %46, %47 : vector<32x1xf32>
    %49 = vector.broadcast %48 : vector<32x1xf32> to vector<32x128xf32>
    %50 = arith.subf %44, %49 : vector<32x128xf32>
    %51 = arith.mulf %50, %50 : vector<32x128xf32>
    %cst_16 = arith.constant dense<0.000000e+00> : vector<32xf32>
    %52 = vector.multi_reduction <add>, %51, %cst_16 [1] : vector<32x128xf32> to vector<32xf32>
    %53 = vector.shape_cast %52 : vector<32xf32> to vector<32x1xf32>
    %cst_17 = arith.constant 1.280000e+02 : f32
    %54 = vector.broadcast %cst_17 : f32 to vector<32x1xf32>
    %55 = arith.divf %53, %54 : vector<32x1xf32>
    %56 = vector.broadcast %48 : vector<32x1xf32> to vector<32x128xf32>
    %57 = arith.subf %44, %56 : vector<32x128xf32>
    %cst_18 = arith.constant 9.99999974E-6 : f32
    %58 = vector.broadcast %cst_18 : f32 to vector<32x1xf32>
    %59 = arith.addf %55, %58 : vector<32x1xf32>
    %60 = math.rsqrt %59 : vector<32x1xf32>
    %61 = vector.broadcast %60 : vector<32x1xf32> to vector<32x128xf32>
    %62 = arith.mulf %57, %61 : vector<32x128xf32>
    %63 = vector.broadcast %25 : vector<1x128xf32> to vector<32x128xf32>
    %64 = arith.mulf %62, %63 : vector<32x128xf32>
    %65 = vector.broadcast %26 : vector<1x128xf32> to vector<32x128xf32>
    %66 = arith.addf %64, %65 : vector<32x128xf32>
    %cst_19 = arith.constant 0.000000e+00 : f32
    %67 = vector.broadcast %cst_19 : f32 to vector<32x128xf32>
    %68 = arith.maximumf %66, %67 : vector<32x128xf32>
    %c1_20 = arith.constant 1 : index
    %c0_21 = arith.constant 0 : index
    %c0_22 = arith.constant 0 : index
    %69 = vector.load %arg1[%c1_20, %c0_21, %c0_22] : memref<2x384x128xf32, #tpu.memory_space<vmem>>, vector<1x384x128xf32>
    %70 = vector.shape_cast %69 : vector<1x384x128xf32> to vector<384x128xf32>
    %c3 = arith.constant 3 : index
    %c0_23 = arith.constant 0 : index
    %71 = vector.load %arg2[%c3, %c0_23] : memref<10x128xf32, #tpu.memory_space<vmem>>, vector<1x128xf32>
    %c4 = arith.constant 4 : index
    %c0_24 = arith.constant 0 : index
    %72 = vector.load %arg2[%c4, %c0_24] : memref<10x128xf32, #tpu.memory_space<vmem>>, vector<1x128xf32>
    %c5 = arith.constant 5 : index
    %c0_25 = arith.constant 0 : index
    %73 = vector.load %arg2[%c5, %c0_25] : memref<10x128xf32, #tpu.memory_space<vmem>>, vector<1x128xf32>
    %74 = vector.extract_strided_slice %68 {offsets = [31, 0], sizes = [1, 128], strides = [1, 1]} : vector<32x128xf32> to vector<1x128xf32>
    %75 = vector.extract_strided_slice %68 {offsets = [0, 0], sizes = [31, 128], strides = [1, 1]} : vector<32x128xf32> to vector<31x128xf32>
    %76 = tpu.concatenate %74, %75 in 0 : vector<1x128xf32>, vector<31x128xf32> -> vector<32x128xf32>
    %cst_26 = arith.constant 0.000000e+00 : f32
    %77 = vector.shape_cast %19 : vector<32x1xi1> to vector<32x1xi1>
    %78 = vector.broadcast %77 : vector<32x1xi1> to vector<32x128xi1>
    %79 = vector.broadcast %cst_26 : f32 to vector<32x128xf32>
    %80 = arith.select %78, %79, %76 : vector<32x128xi1>, vector<32x128xf32>
    %81 = vector.extract_strided_slice %68 {offsets = [1, 0], sizes = [31, 128], strides = [1, 1]} : vector<32x128xf32> to vector<31x128xf32>
    %82 = vector.extract_strided_slice %68 {offsets = [0, 0], sizes = [1, 128], strides = [1, 1]} : vector<32x128xf32> to vector<1x128xf32>
    %83 = tpu.concatenate %81, %82 in 0 : vector<31x128xf32>, vector<1x128xf32> -> vector<32x128xf32>
    %cst_27 = arith.constant 0.000000e+00 : f32
    %84 = vector.shape_cast %21 : vector<32x1xi1> to vector<32x1xi1>
    %85 = vector.broadcast %84 : vector<32x1xi1> to vector<32x128xi1>
    %86 = vector.broadcast %cst_27 : f32 to vector<32x128xf32>
    %87 = arith.select %85, %86, %83 : vector<32x128xi1>, vector<32x128xf32>
    %88 = tpu.concatenate %80, %68, %87 in 1 : vector<32x128xf32>, vector<32x128xf32>, vector<32x128xf32> -> vector<32x384xf32>
    %cst_28 = arith.constant dense<0.000000e+00> : vector<32x128xf32>
    %89 = tpu.matmul %88, %70, %cst_28 {dimension_numbers = #tpu.dot_dimension_numbers<[1], [0], [0], [1], [0, 0, 1, 1], [], []>} : vector<32x384xf32>, vector<384x128xf32>, vector<32x128xf32> -> vector<32x128xf32>
    %90 = vector.broadcast %71 : vector<1x128xf32> to vector<32x128xf32>
    %91 = arith.addf %89, %90 : vector<32x128xf32>
    %cst_29 = arith.constant dense<0.000000e+00> : vector<32xf32>
    %92 = vector.multi_reduction <add>, %91, %cst_29 [1] : vector<32x128xf32> to vector<32xf32>
    %93 = vector.shape_cast %92 : vector<32xf32> to vector<32x1xf32>
    %cst_30 = arith.constant 1.280000e+02 : f32
    %94 = vector.broadcast %cst_30 : f32 to vector<32x1xf32>
    %95 = arith.divf %93, %94 : vector<32x1xf32>
    %96 = vector.broadcast %95 : vector<32x1xf32> to vector<32x128xf32>
    %97 = arith.subf %91, %96 : vector<32x128xf32>
    %98 = arith.mulf %97, %97 : vector<32x128xf32>
    %cst_31 = arith.constant dense<0.000000e+00> : vector<32xf32>
    %99 = vector.multi_reduction <add>, %98, %cst_31 [1] : vector<32x128xf32> to vector<32xf32>
    %100 = vector.shape_cast %99 : vector<32xf32> to vector<32x1xf32>
    %cst_32 = arith.constant 1.280000e+02 : f32
    %101 = vector.broadcast %cst_32 : f32 to vector<32x1xf32>
    %102 = arith.divf %100, %101 : vector<32x1xf32>
    %103 = vector.broadcast %95 : vector<32x1xf32> to vector<32x128xf32>
    %104 = arith.subf %91, %103 : vector<32x128xf32>
    %cst_33 = arith.constant 9.99999974E-6 : f32
    %105 = vector.broadcast %cst_33 : f32 to vector<32x1xf32>
    %106 = arith.addf %102, %105 : vector<32x1xf32>
    %107 = math.rsqrt %106 : vector<32x1xf32>
    %108 = vector.broadcast %107 : vector<32x1xf32> to vector<32x128xf32>
    %109 = arith.mulf %104, %108 : vector<32x128xf32>
    %110 = vector.broadcast %72 : vector<1x128xf32> to vector<32x128xf32>
    %111 = arith.mulf %109, %110 : vector<32x128xf32>
    %112 = vector.broadcast %73 : vector<1x128xf32> to vector<32x128xf32>
    %113 = arith.addf %111, %112 : vector<32x128xf32>
    %cst_34 = arith.constant 0.000000e+00 : f32
    %114 = vector.broadcast %cst_34 : f32 to vector<32x128xf32>
    %115 = arith.maximumf %113, %114 : vector<32x128xf32>
    %c6 = arith.constant 6 : index
    %c0_35 = arith.constant 0 : index
    %116 = vector.load %arg2[%c6, %c0_35] : memref<10x128xf32, #tpu.memory_space<vmem>>, vector<1x128xf32>
    %c7 = arith.constant 7 : index
    %c0_36 = arith.constant 0 : index
    %117 = vector.load %arg2[%c7, %c0_36] : memref<10x128xf32, #tpu.memory_space<vmem>>, vector<1x1xf32>
    "tpu.trace_start"() <{level = 10 : i32, message = "of,nf->on"}> : () -> ()
    %cst_37 = arith.constant dense<0.000000e+00> : vector<1x32xf32>
    %118 = tpu.matmul %116, %115, %cst_37 {dimension_numbers = #tpu.dot_dimension_numbers<[1], [1], [0], [0], [0, 0, 1, 0], [], []>} : vector<1x128xf32>, vector<32x128xf32>, vector<1x32xf32> -> vector<1x32xf32>
    "tpu.trace_stop"() : () -> ()
    %119 = vector.broadcast %117 : vector<1x1xf32> to vector<1x32xf32>
    %120 = arith.addf %118, %119 : vector<1x32xf32>
    %cst_38 = arith.constant 0.000000e+00 : f32
    %121 = vector.broadcast %cst_38 : f32 to vector<1x32xf32>
    %122 = arith.maximumf %120, %121 : vector<1x32xf32>
    %c0_39 = arith.constant 0 : index
    %c0_40 = arith.constant 0 : index
    %123 = vector.load %arg3[%c0_39, %c0_40] : memref<1x32xf32, #tpu.memory_space<vmem>>, vector<1x32xf32>
    tpu.vector_store %arg3[%c0_39, %c0_40], %122 {strides = array<i32>} : memref<1x32xf32, #tpu.memory_space<vmem>>, vector<1x32xf32>,
    return
  }
}

</mosaic_0001>

<bundles_post_ra>
// kernel: tpu_custom_call.1
= control target key start
LH: loop header
LB: loop body
LE: loop exit
PB: predicated region body
PF: predicated region fallthrough
CT: control target
= control target key end

     0   :  { %8 = vsyncpa [#allocation3], 0  ;;  %s1158_s0 = inlined_call_operand.hbm [shape: f32[32,128], index: 0, kind: input, shape index: {}]   ;;  %s1159_s1 = inlined_call_operand.hbm [shape: f32[2,384,128], index: 1, kind: input, shape index: {}]   ;;  %s1160_s2 = inlined_call_operand.hbm [shape: f32[10,128], index: 2, kind: input, shape index: {}]   ;;  %s1161_s3 = inlined_call_operand.hbm [shape: f32[1,32], index: 3, kind: output, shape index: {}]  }
   0x1   :  { %9 = vsyncpa [#allocation6], 0 }
   0x2   :  { %10 = vsyncpa [#allocation4], 0  ;;  %s28_s14 = sshll.u32 %s1159_s1, 4  ;;  %s915_s15 = smov [#allocation5]   ;;  %s29_s14 = int_to_ptr.hbm [resolvable:$true] %s28_s14 }
   0x3   :  { %s30_s16 = sshll.u32 %s915_s15, 4  ;;  %s15_s19 = sshll.u32 %s1158_s0, 4  ;;  %s31_s16 = int_to_ptr.vmem [resolvable:$true] %s30_s16  ;;  %s16_s19 = int_to_ptr.hbm [resolvable:$true] %s15_s19 }
   0x4   :  { %s916_s20 = smov 128   ;;  %s917_s21 = smov 8  }
   0x5   :  { %36 = dma.hbm_to_vmem [thread:$0]  %s29_s14, 12288, %s31_s16, [#allocation6], %s916_s20, %s916_s20, %s917_s21  }
   0x6   :  { %s918_s22 = smov [#allocation2]   ;;  %s41_s26 = sshll.u32 %s1160_s2, 4  ;;  %s42_s26 = int_to_ptr.hbm [resolvable:$true] %s41_s26 }
   0x7   :  { %s17_s23 = sshll.u32 %s918_s22, 4  ;;  %s919_s1 = smov [#allocation7]   ;;  %s18_s23 = int_to_ptr.vmem [resolvable:$true] %s17_s23 }
   0x8   :  { %23 = dma.hbm_to_vmem [thread:$0]  %s16_s19, 512, %s18_s23, [#allocation3], %s916_s20, %s916_s20, %s917_s21  }
   0x9   :  { %s43_s27 = sshll.u32 %s919_s1, 4  ;;  %s44_s27 = int_to_ptr.vmem [resolvable:$true] %s43_s27 }
   0xa   :  { %49 = dma.hbm_to_vmem [thread:$0]  %s42_s26, 256, %s44_s27, [#allocation6], %s916_s20, %s916_s20, %s917_s21  }
   0xb   :  { %909 = dma.done.wait [#allocation3], 512  }
   0xc   :  { %910 = vsyncadd [#allocation3], 4294966784 }
   0xd   :  { %911 = dma.done.wait [#allocation6], 12544  }
   0xe   :  { %912 = vsyncadd [#allocation6], 4294954752  ;;  %v174_v0 = vld [vmem:[#allocation5 + $0x178] sm:$0xff]  ;;  %v173_v2 = vld [vmem:[#allocation5 + $0x170] sm:$0xff]  ;;  %v66_v29 = vlaneseq  ;;  %vm208_vm0 = vcmask 1046528   ;;  %vm184_vm1 = vcmask 1040384  }
   0xf   :  { %v142_v1 = vld [vmem:[#allocation5 + $0x78] sm:$0xff]  ;;  %293 = vmatpush.msra.mxu2 %v174_v0  ;;  %v141_v3 = vld [vmem:[#allocation5 + $0x70] sm:$0xff]  ;;  %v172_v5 = vld [vmem:[#allocation5 + $0x168] sm:$0xff]  ;;  %s922_s0 = smov [#allocation8]   ;;  %s732_s30 = sshll.u32 %s1161_s3, 4  ;;  %s733_s30 = int_to_ptr.hbm [resolvable:$true] %s732_s30 }
  0x10   :  { %235 = vmatpush.msra.mxu0 %v142_v1  ;;  %v158_v4 = vld [vmem:[#allocation5 + $0xf8] sm:$0xff]  ;;  %v140_v6 = vld [vmem:[#allocation5 + $0x68] sm:$0xff]  ;;  %v157_v7 = vld [vmem:[#allocation5 + $0xf0] sm:$0xff]  ;;  %v952_v36 = vshrl.u32 %v66_v29, 7  ;;  %s730_s2 = sshll.u32 %s922_s0, 4  ;;  %s731_s2 = int_to_ptr.vmem [resolvable:$true] %s730_s2 }
  0x11   :  { %264 = vmatpush.msra.mxu1 %v158_v4  ;;  %294 = vmatpush.msra.mxu2 %v173_v2  ;;  %v156_v8 = vld [vmem:[#allocation5 + $0xe8] sm:$0xff]  ;;  %v171_v9 = vld [vmem:[#allocation5 + $0x160] sm:$0xff]  ;;  %v170_v12 = vld [vmem:[#allocation5 + $0x158] sm:$0xff] }
  0x12   :  { %236 = vmatpush.msra.mxu0 %v141_v3  ;;  %v139_v10 = vld [vmem:[#allocation5 + $0x60] sm:$0xff]  ;;  %v138_v13 = vld [vmem:[#allocation5 + $0x58] sm:$0xff]  ;;  %v169_v15 = vld [vmem:[#allocation5 + $0x150] sm:$0xff]  ;;  %v75_v46 = vand.u32 15, %v952_v36  ;;  %v68_v60 = vadd.s32 8, %v952_v36 }
  0x13   :  { %265 = vmatpush.msra.mxu1 %v157_v7  ;;  %295 = vmatpush.msra.mxu2 %v172_v5  ;;  %v155_v11 = vld [vmem:[#allocation5 + $0xe0] sm:$0xff]  ;;  %v154_v14 = vld [vmem:[#allocation5 + $0xd8] sm:$0xff]  ;;  %v137_v16 = vld [vmem:[#allocation5 + $0x50] sm:$0xff]  ;;  %v69_v5 = vadd.s32 16, %v952_v36 }
  0x14   :  { %237 = vmatpush.msra.mxu0 %v140_v6  ;;  %v153_v17 = vld [vmem:[#allocation5 + $0xd0] sm:$0xff]  ;;  %v168_v18 = vld [vmem:[#allocation5 + $0x148] sm:$0xff]  ;;  %v167_v21 = vld [vmem:[#allocation5 + $0x140] sm:$0xff]  ;;  %vm964_vm2 = vcmp.ne.s32.totalorder %v75_v46, 0  ;;  %v82_v63 = vand.u32 15, %v68_v60 }
  0x15   :  { %266 = vmatpush.msra.mxu1 %v156_v8  ;;  %296 = vmatpush.msra.mxu2 %v171_v9  ;;  %v136_v19 = vld [vmem:[#allocation5 + $0x48] sm:$0xff]  ;;  %v135_v22 = vld [vmem:[#allocation5 + $0x40] sm:$0xff]  ;;  %v166_v24 = vld [vmem:[#allocation5 + $0x138] sm:$0xff]  ;;  %v89_v7 = vand.u32 15, %v69_v5 }
  0x16   :  { %238 = vmatpush.msra.mxu0 %v139_v10  ;;  %v152_v20 = vld [vmem:[#allocation5 + $0xc8] sm:$0xff]  ;;  %v151_v23 = vld [vmem:[#allocation5 + $0xc0] sm:$0xff]  ;;  %v134_v25 = vld [vmem:[#allocation5 + $0x38] sm:$0xff]  ;;  %vm973_vm3 = vcmp.ne.s32.totalorder %v82_v63, 15 }
  0x17   :  { %267 = vmatpush.msra.mxu1 %v155_v11  ;;  %297 = vmatpush.msra.mxu2 %v170_v12  ;;  %v150_v26 = vld [vmem:[#allocation5 + $0xb8] sm:$0xff]  ;;  %v165_v27 = vld [vmem:[#allocation5 + $0x130] sm:$0xff]  ;;  %v164_v30 = vld [vmem:[#allocation5 + $0x128] sm:$0xff]  ;;  %vm984_vm4 = vcmp.ne.s32.totalorder %v89_v7, 0  ;;  %v70_v12 = vadd.s32 24, %v952_v36 }
  0x18   :  { %239 = vmatpush.msra.mxu0 %v138_v13  ;;  %v133_v28 = vld [vmem:[#allocation5 + $0x30] sm:$0xff]  ;;  %v132_v31 = vld [vmem:[#allocation5 + $0x28] sm:$0xff]  ;;  %v163_v33 = vld [vmem:[#allocation5 + $0x120] sm:$0xff] }
  0x19   :  { %268 = vmatpush.msra.mxu1 %v154_v14  ;;  %298 = vmatpush.msra.mxu2 %v169_v15  ;;  %v149_v32 = vld [vmem:[#allocation5 + $0xb0] sm:$0xff]  ;;  %v148_v34 = vld [vmem:[#allocation5 + $0xa8] sm:$0xff]  ;;  %v131_v35 = vld [vmem:[#allocation5 + $0x20] sm:$0xff]  ;;  %v96_v13 = vand.u32 15, %v70_v12 }
  0x1a   :  { %240 = vmatpush.msra.mxu0 %v137_v16  ;;  %v162_v37 = vld [vmem:[#allocation5 + $0x118] sm:$0xff]  ;;  %v147_v39 = vld [vmem:[#allocation5 + $0xa0] sm:$0xff]  ;;  %v63_v41 = vld [vmem:[#allocation2 + $0x8] sm:$0xff] }
  0x1b   :  { %269 = vmatpush.msra.mxu1 %v153_v17  ;;  %299 = vmatpush.msra.mxu2 %v168_v18  ;;  %v130_v38 = vld [vmem:[#allocation5 + $0x18] sm:$0xff]  ;;  %v954_v40 = vld [vmem:[#allocation2] sm:$0xff]  ;;  %v161_v44 = vld [vmem:[#allocation5 + $0x110] sm:$0xff]  ;;  %v210_v49 = vrot.slane %v63_v41, 1  ;;  %v186_v1 = vrot.slane %v63_v41, 7  ;;  %vm992_vm5 = vcmp.ne.s32.totalorder %v96_v13, 15 }
  0x1c   :  { %241 = vmatpush.msra.mxu0 %v136_v19  ;;  %v956_v42 = vld [vmem:[#allocation2 + $0x18] sm:$0xff]  ;;  %v129_v45 = vld [vmem:[#allocation5 + $0x10] sm:$0xff]  ;;  %v209_v48 = vrot.slane %v954_v40, 1  ;;  %v185_v51 = vrot.slane %v954_v40, 7  ;;  %v160_v52 = vld [vmem:[#allocation5 + $0x108] sm:$0xff] }
  0x1d   :  { %270 = vmatpush.msra.mxu1 %v152_v20  ;;  %300 = vmatpush.msra.mxu2 %v167_v21  ;;  %v146_v43 = vld [vmem:[#allocation5 + $0x98] sm:$0xff]  ;;  %v145_v47 = vld [vmem:[#allocation5 + $0x90] sm:$0xff]  ;;  %v179_v50 = vrot.slane %v956_v42, 7  ;;  %v128_v53 = vld [vmem:[#allocation5 + $0x8] sm:$0xff]  ;;  %v214_v6 = vrot.slane %v956_v42, 1 }
  0x1e   :  { %242 = vmatpush.msra.mxu0 %v135_v22  ;;  %v144_v54 = vld [vmem:[#allocation5 + $0x88] sm:$0xff]  ;;  %v159_v55 = vld [vmem:[#allocation5 + $0x100] sm:$0xff]  ;;  %v211_v57 = vsel %vm208_vm0, %v209_v48, %v210_v49  ;;  %v64_v62 = vld [vmem:[#allocation2 + $0x10] sm:$0xff]  ;;  %v187_v4 = vsel %vm184_vm1, %v185_v51, %v186_v1 }
  0x1f   :  { %271 = vmatpush.msra.mxu1 %v151_v23  ;;  %301 = vmatpush.msra.mxu2 %v166_v24  ;;  %v127_v56 = vld [vmem:[#allocation5] sm:$0xff]  ;;  %v195_v58 = vsel %vm184_vm1, %v179_v50, %v185_v51  ;;  %v212_v0 = vrot.slane %v64_v62, 1  ;;  %v188_v8 = vrot.slane %v64_v62, 7  ;;  %v221_v14 = vsel %vm208_vm0, %v214_v6, %v209_v48  ;;  %v1028_v5 = vld [vmem:[#allocation5 + $0x268] sm:$0xff]  ;;  %v1034_v7 = vld [vmem:[#allocation5 + $0x258] sm:$0xff] }
  0x20   :  { %243 = vmatpush.msra.mxu0 %v134_v25  ;;  %v143_v61 = vld [vmem:[#allocation5 + $0x80] sm:$0xff]  ;;  %v470_v12 = vld [vmem:[#allocation5 + $0x2f0] sm:$0xff] }
  0x21   :  { %272 = vmatpush.msra.mxu1 %v150_v26  ;;  %302 = vmatpush.msra.mxu2 %v165_v27  ;;  %v213_v2 = vsel %vm208_vm0, %v210_v49, %v212_v0  ;;  %v215_v9 = vsel %vm208_vm0, %v212_v0, %v214_v6  ;;  %v189_v10 = vsel %vm184_vm1, %v186_v1, %v188_v8  ;;  %v789_v17 = vld [vmem:[#allocation7] ss:$0 sm:$0xff]  ;;  %v1002_v49 = vld [vmem:[#allocation5 + $0x278] sm:$0xff] }
  0x22   :  { %244 = vmatpush.msra.mxu0 %v133_v28  ;;  %v190_v16 = vsel %vm184_vm1, %v188_v8, %v179_v50  ;;  %v1031_v6 = vld [vmem:[#allocation5 + $0x260] sm:$0xff]  ;;  %v1037_v8 = vld [vmem:[#allocation5 + $0x250] sm:$0xff] }
  0x23   :  { %273 = vmatpush.msra.mxu1 %v149_v32  ;;  %303 = vmatpush.msra.mxu2 %v164_v30  ;;  %v1043_v13 = vld [vmem:[#allocation5 + $0x240] sm:$0xff] }
  0x24   :  { %245 = vmatpush.msra.mxu0 %v132_v31 }
  0x25   :  { %274 = vmatpush.msra.mxu1 %v148_v34  ;;  %304 = vmatpush.msra.mxu2 %v163_v33 }
  0x26   :  { %246 = vmatpush.msra.mxu0 %v131_v35 }
  0x27   :  { %275 = vmatpush.msra.mxu1 %v147_v39  ;;  %305 = vmatpush.msra.mxu2 %v162_v37 }
  0x28   :  { %247 = vmatpush.msra.mxu0 %v130_v38 }
  0x29   :  { %276 = vmatpush.msra.mxu1 %v146_v43  ;;  %306 = vmatpush.msra.mxu2 %v161_v44 }
  0x2a   :  { %248 = vmatpush.msra.mxu0 %v129_v45 }
  0x2b   :  { %277 = vmatpush.msra.mxu1 %v145_v47  ;;  %307 = vmatpush.msra.mxu2 %v160_v52 }
  0x2c   :  { %249 = vmatpush.msra.mxu0 %v128_v53 }
  0x2d   :  { %278 = vmatpush.msra.mxu1 %v144_v54  ;;  %308 = vmatpush.msra.mxu2 %v159_v55 }
  0x2e   :  { %250 = vmatpush.msra.mxu0 %v127_v56  ;;  %309 = vmatmul.f32.vlgmr.msra.gmra.mxu2 %v211_v57 }
  0x2f   :  { %744 = vmatmul.msk.f32.vlgmr.msra.gmra.mxu0 %vm964_vm2, %v195_v58  ;;  %279 = vmatpush.msra.mxu1 %v143_v61 }
  0x30   :  { %280 = vmatmul.f32.vlgmr.msra.gmra.mxu1 %v954_v40  ;;  %543 = vmatpush.msrb.mxu0 %v1002_v49 }
  0x36   :  { %748 = vmatmul.msk.f32.gmra.mxu2 %vm973_vm3, %v213_v2 }
  0x37   :  { %254 = vmatmul.f32.gmra.mxu0 %v187_v4  ;;  %v1025_v4 = vld [vmem:[#allocation5 + $0x270] sm:$0xff] }
  0x38   :  { %283 = vmatmul.f32.gmra.mxu1 %v63_v41  ;;  %544 = vmatpush.msrb.mxu0 %v1025_v4 }
  0x3a   :  { %545 = vmatpush.msrb.mxu0 %v1028_v5 }
  0x3c   :  { %546 = vmatpush.msrb.mxu0 %v1031_v6 }
  0x3e   :  { %315 = vmatmul.f32.gmra.mxu2 %v215_v9  ;;  %547 = vmatpush.msrb.mxu0 %v1034_v7  ;;  %v471_v9 = vld [vmem:[#allocation5 + $0x2f8] sm:$0xff] }
  0x3f   :  { %746 = vmatmul.msk.f32.gmra.mxu0 %vm984_vm4, %v189_v10  ;;  %572 = vmatpush.msrb.mxu1 %v471_v9  ;;  %v1040_v10 = vld [vmem:[#allocation5 + $0x248] sm:$0xff] }
  0x40   :  { %286 = vmatmul.f32.gmra.mxu1 %v64_v62  ;;  %548 = vmatpush.msrb.mxu0 %v1037_v8 }
  0x41   :  { %573 = vmatpush.msrb.mxu1 %v470_v12 }
  0x42   :  { %549 = vmatpush.msrb.mxu0 %v1040_v10 }
  0x44   :  { %550 = vmatpush.msrb.mxu0 %v1043_v13 }
  0x46   :  { %750 = vmatmul.msk.f32.gmra.mxu2 %vm992_vm5, %v221_v14  ;;  %v469_v14 = vld [vmem:[#allocation5 + $0x2e8] sm:$0xff] }
  0x47   :  { %260 = vmatmul.f32.gmra.mxu0 %v190_v16  ;;  %574 = vmatpush.msrb.mxu1 %v469_v14  ;;  %v1046_v16 = vld [vmem:[#allocation5 + $0x238] sm:$0xff] }
  0x48   :  { %289 = vmatmul.f32.gmra.mxu1 %v956_v42  ;;  %v920_v42 = vmov 128.0   ;;  %551 = vmatpush.msrb.mxu0 %v1046_v16  ;;  %v427_v14 = vld [vmem:[#allocation5 + $0x198] sm:$0xff] }
  0x49   :  { %795 = vrcp.f32 %v920_v42  ;;  %v434_v42 = vld [vmem:[#allocation5 + $0x1d0] sm:$0xff] }
  0x4f   :  { %v796_v43 = vpop.eup %795 }
  0x50   :  { %v331_v44 = vmul.f32 128.0, %v796_v43  ;;  %vm335_vm6 = vweird.f32 %v796_v43 }
  0x52   :  { %v332_v45 = vsub.f32 1.0, %v331_v44  ;;  %v433_v44 = vld [vmem:[#allocation5 + $0x1c8] sm:$0xff] }
  0x54   :  { %v333_v46 = vmul.f32 %v796_v43, %v332_v45  ;;  %v457_v45 = vld [vmem:[#allocation5 + $0x288] sm:$0xff] }
  0x56   :  { %v334_v47 = vadd.f32 %v796_v43, %v333_v46 }
  0x58   :  { %v1000_v48 = vsel %vm335_vm6, %v796_v43, %v334_v47  ;;  %v458_v43 = vld [vmem:[#allocation5 + $0x290] sm:$0xff]  ;;  %v432_v47 = vld [vmem:[#allocation5 + $0x1c0] sm:$0xff] }
  0xac   :  { %v252_v18 = vpop.f32.mrf.mxu0 }
  0xad   :  { %v253_v19 = vadd.f32 %v789_v17, %v252_v18  ;;  %v281_v20 = vpop.f32.mrf.mxu1  ;;  %v1049_v18 = vld [vmem:[#allocation5 + $0x230] sm:$0xff] }
  0xae   :  { %552 = vmatpush.msrb.mxu0 %v1049_v18 }
  0xaf   :  { %v282_v21 = vadd.f32 %v281_v20, %v253_v19  ;;  %v467_v19 = vld [vmem:[#allocation5 + $0x2d8] sm:$0xff]  ;;  %v1052_v20 = vld [vmem:[#allocation5 + $0x228] sm:$0xff] }
  0xb0   :  { %553 = vmatpush.msrb.mxu0 %v1052_v20 }
  0xb1   :  { %v310_v22 = vpop.f32.mrf.mxu2 }
  0xb2   :  { %v311_v23 = vadd.f32 %v310_v22, %v282_v21  ;;  %v466_v21 = vld [vmem:[#allocation5 + $0x2d0] sm:$0xff]  ;;  %v1055_v22 = vld [vmem:[#allocation5 + $0x220] sm:$0xff] }
  0xb3   :  { %554 = vmatpush.msrb.mxu0 %v1055_v22 }
  0xb4   :  { %v255_v24 = vpop.f32.mrf.mxu0  ;;  %322 = vadd.xlane.f32.xlu0 %v311_v23 }
  0xb5   :  { %v256_v25 = vadd.f32 %v789_v17, %v255_v24  ;;  %v284_v26 = vpop.f32.mrf.mxu1  ;;  %v1058_v24 = vld [vmem:[#allocation5 + $0x218] sm:$0xff] }
  0xb6   :  { %555 = vmatpush.msrb.mxu0 %v1058_v24 }
  0xb7   :  { %v285_v27 = vadd.f32 %v284_v26, %v256_v25  ;;  %v464_v25 = vld [vmem:[#allocation5 + $0x2c0] sm:$0xff]  ;;  %v1061_v26 = vld [vmem:[#allocation5 + $0x210] sm:$0xff] }
  0xb8   :  { %556 = vmatpush.msrb.mxu0 %v1061_v26 }
  0xb9   :  { %v313_v28 = vpop.f32.mrf.mxu2 }
  0xba   :  { %v314_v29 = vadd.f32 %v313_v28, %v285_v27  ;;  %v439_v27 = vld [vmem:[#allocation5 + $0x1f8] sm:$0xff] }
  0xbb   :  { %v463_v28 = vld [vmem:[#allocation5 + $0x2b8] sm:$0xff]  ;;  %514 = vmatpush.msra.mxu3 %v439_v27  ;;  %v425_v27 = vld [vmem:[#allocation5 + $0x188] sm:$0xff] }
  0xbc   :  { %v258_v30 = vpop.f32.mrf.mxu0  ;;  %324 = vadd.xlane.f32.xlu1 %v314_v29 }
  0xbd   :  { %v259_v31 = vadd.f32 %v789_v17, %v258_v30  ;;  %v287_v32 = vpop.f32.mrf.mxu1  ;;  %v438_v30 = vld [vmem:[#allocation5 + $0x1f0] sm:$0xff] }
  0xbe   :  { %515 = vmatpush.msra.mxu3 %v438_v30 }
  0xbf   :  { %v288_v33 = vadd.f32 %v287_v32, %v259_v31  ;;  %v462_v31 = vld [vmem:[#allocation5 + $0x2b0] sm:$0xff]  ;;  %v1067_v32 = vld [vmem:[#allocation5 + $0x200] sm:$0xff] }
  0xc1   :  { %v316_v34 = vpop.f32.mrf.mxu2 }
  0xc2   :  { %v317_v35 = vadd.f32 %v316_v34, %v288_v33  ;;  %v437_v33 = vld [vmem:[#allocation5 + $0x1e8] sm:$0xff] }
  0xc3   :  { %v461_v34 = vld [vmem:[#allocation5 + $0x2a8] sm:$0xff]  ;;  %516 = vmatpush.msra.mxu3 %v437_v33  ;;  %v424_v33 = vld [vmem:[#allocation5 + $0x180] sm:$0xff] }
  0xc4   :  { %v261_v36 = vpop.f32.mrf.mxu0  ;;  %326 = vadd.xlane.f32.xlu1 %v317_v35 }
  0xc5   :  { %v262_v37 = vadd.f32 %v789_v17, %v261_v36  ;;  %v290_v38 = vpop.f32.mrf.mxu1  ;;  %v468_v17 = vld [vmem:[#allocation5 + $0x2e0] sm:$0xff] }
  0xc6   :  { %575 = vmatpush.msrb.mxu1 %v468_v17  ;;  %v436_v36 = vld [vmem:[#allocation5 + $0x1e0] sm:$0xff]  ;;  %v426_v17 = vld [vmem:[#allocation5 + $0x190] sm:$0xff] }
  0xc7   :  { %v291_v39 = vadd.f32 %v290_v38, %v262_v37  ;;  %v460_v37 = vld [vmem:[#allocation5 + $0x2a0] sm:$0xff]  ;;  %517 = vmatpush.msra.mxu3 %v436_v36 }
  0xc8   :  { %576 = vmatpush.msrb.mxu1 %v467_v19 }
  0xc9   :  { %v319_v40 = vpop.f32.mrf.mxu2 }
  0xca   :  { %v320_v41 = vadd.f32 %v319_v40, %v291_v39  ;;  %577 = vmatpush.msrb.mxu1 %v466_v21  ;;  %v435_v39 = vld [vmem:[#allocation5 + $0x1d8] sm:$0xff] }
  0xcb   :  { %v459_v40 = vld [vmem:[#allocation5 + $0x298] sm:$0xff]  ;;  %518 = vmatpush.msra.mxu3 %v435_v39 }
  0xcc   :  { %328 = vadd.xlane.f32.xlu0 %v320_v41 }
  0xcd   :  { %519 = vmatpush.msra.mxu3 %v434_v42 }
  0xcf   :  { %520 = vmatpush.msra.mxu3 %v433_v44 }
  0xd1   :  { %521 = vmatpush.msra.mxu3 %v432_v47 }
 0x127   :  { %v323_v50 = vpop.xlane.xlu0 %322 }
 0x128   :  { %v337_v51 = vmul.f32 %v1000_v48, %v323_v50  ;;  %v456_v50 = vld [vmem:[#allocation5 + $0x280] sm:$0xff] }
 0x12a   :  { %v1006_v52 = vsub.f32 %v311_v23, %v337_v51  ;;  %v465_v23 = vld [vmem:[#allocation5 + $0x2c8] sm:$0xff] }
 0x12b   :  { %578 = vmatpush.msrb.mxu1 %v465_v23 }
 0x12c   :  { %v345_v53 = vmul.f32 %v1006_v52, %v1006_v52 }
 0x12d   :  { %579 = vmatpush.msrb.mxu1 %v464_v25 }
 0x12e   :  { %349 = vadd.xlane.f32.xlu2 %v345_v53  ;;  %v431_v53 = vld [vmem:[#allocation5 + $0x1b8] sm:$0xff] }
 0x12f   :  { %v325_v54 = vpop.xlane.xlu1 %324  ;;  %580 = vmatpush.msrb.mxu1 %v463_v28  ;;  %522 = vmatpush.msra.mxu3 %v431_v53  ;;  %v1073_v28 = vld [vmem:[#allocation7 + $0x1] ss:$0 sm:$0xff] }
 0x130   :  { %v338_v55 = vmul.f32 %v1000_v48, %v325_v54 }
 0x131   :  { %581 = vmatpush.msrb.mxu1 %v462_v31 }
 0x132   :  { %v1011_v56 = vsub.f32 %v314_v29, %v338_v55  ;;  %v1064_v29 = vld [vmem:[#allocation5 + $0x208] sm:$0xff] }
 0x133   :  { %557 = vmatpush.msrb.mxu0 %v1064_v29  ;;  %582 = vmatpush.msrb.mxu1 %v461_v34 }
 0x134   :  { %v346_v57 = vmul.f32 %v1011_v56, %v1011_v56 }
 0x135   :  { %558 = vmatpush.msrb.mxu0 %v1067_v32  ;;  %583 = vmatpush.msrb.mxu1 %v460_v37 }
 0x136   :  { %351 = vadd.xlane.f32.xlu0 %v346_v57 }
 0x137   :  { %v327_v58 = vpop.xlane.xlu1 %326  ;;  %584 = vmatpush.msrb.mxu1 %v459_v40 }
 0x138   :  { %v339_v60 = vmul.f32 %v1000_v48, %v327_v58  ;;  %v430_v58 = vld [vmem:[#allocation5 + $0x1b0] sm:$0xff] }
 0x139   :  { %585 = vmatpush.msrb.mxu1 %v458_v43  ;;  %523 = vmatpush.msra.mxu3 %v430_v58 }
 0x13a   :  { %v1016_v61 = vsub.f32 %v317_v35, %v339_v60 }
 0x13b   :  { %586 = vmatpush.msrb.mxu1 %v457_v45 }
 0x13c   :  { %v347_v62 = vmul.f32 %v1016_v61, %v1016_v61 }
 0x13d   :  { %587 = vmatpush.msrb.mxu1 %v456_v50 }
 0x13e   :  { %353 = vadd.xlane.f32.xlu1 %v347_v62  ;;  %v429_v62 = vld [vmem:[#allocation5 + $0x1a8] sm:$0xff] }
 0x13f   :  { %v329_v63 = vpop.xlane.xlu0 %328  ;;  %524 = vmatpush.msra.mxu3 %v429_v62 }
 0x140   :  { %v340_v0 = vmul.f32 %v1000_v48, %v329_v63 }
 0x142   :  { %v1021_v1 = vsub.f32 %v320_v41, %v340_v0 }
 0x144   :  { %v348_v2 = vmul.f32 %v1021_v1, %v1021_v1 }
 0x146   :  { %355 = vadd.xlane.f32.xlu2 %v348_v2  ;;  %v428_v2 = vld [vmem:[#allocation5 + $0x1a0] sm:$0xff] }
 0x147   :  { %525 = vmatpush.msra.mxu3 %v428_v2 }
 0x149   :  { %526 = vmatpush.msra.mxu3 %v427_v14 }
 0x14b   :  { %527 = vmatpush.msra.mxu3 %v426_v17 }
 0x14d   :  { %528 = vmatpush.msra.mxu3 %v425_v27 }
 0x14f   :  { %529 = vmatpush.msra.mxu3 %v424_v33 }
 0x151   :  { %763 = vmatpush.msrb.mxu3 %v1002_v49 }
 0x153   :  { %764 = vmatpush.msrb.mxu3 %v1025_v4 }
 0x155   :  { %765 = vmatpush.msrb.mxu3 %v1028_v5 }
 0x157   :  { %766 = vmatpush.msrb.mxu3 %v1031_v6 }
 0x159   :  { %767 = vmatpush.msrb.mxu3 %v1034_v7 }
 0x15b   :  { %768 = vmatpush.msrb.mxu3 %v1037_v8 }
 0x15d   :  { %769 = vmatpush.msrb.mxu3 %v1040_v10 }
 0x15f   :  { %770 = vmatpush.msrb.mxu3 %v1043_v13 }
 0x161   :  { %771 = vmatpush.msrb.mxu3 %v1046_v16 }
 0x163   :  { %772 = vmatpush.msrb.mxu3 %v1049_v18 }
 0x165   :  { %773 = vmatpush.msrb.mxu3 %v1052_v20 }
 0x167   :  { %774 = vmatpush.msrb.mxu3 %v1055_v22 }
 0x169   :  { %775 = vmatpush.msrb.mxu3 %v1058_v24 }
 0x16b   :  { %776 = vmatpush.msrb.mxu3 %v1061_v26 }
 0x16d   :  { %777 = vmatpush.msrb.mxu3 %v1064_v29 }
 0x16f   :  { %778 = vmatpush.msrb.mxu3 %v1067_v32 }
 0x1a1   :  { %v350_v35 = vpop.xlane.xlu2 %349 }
 0x1a2   :  { %v357_v38 = vmul.f32 %v350_v35, %v1000_v48  ;;  %v1076_v35 = vld [vmem:[#allocation7 + $0x2] ss:$0 sm:$0xff] }
 0x1a4   :  { %v361_v41 = vadd.f32 1e-05, %v357_v38 }
 0x1a6   :  { %797 = vrsqrt.f32 %v361_v41  ;;  %vm371_vm8 = vweird.f32 %v361_v41 }
 0x1a9   :  { %v352_v46 = vpop.xlane.xlu0 %351 }
 0x1aa   :  { %v358_v51 = vmul.f32 %v352_v46, %v1000_v48 }
 0x1ac   :  { %v798_v54 = vpop.eup %797  ;;  %v362_v55 = vadd.f32 1e-05, %v358_v51 }
 0x1ad   :  { %v366_v57 = vmul.f32 %v798_v54, %v361_v41  ;;  %vm372_vm7 = vweird.f32 %v798_v54 }
 0x1ae   :  { %799 = vrsqrt.f32 %v362_v55  ;;  %vm373_vm9 = vmor %vm371_vm8, %vm372_vm7  ;;  %vm381_vm11 = vweird.f32 %v362_v55 }
 0x1af   :  { %v367_v60 = vmul.f32 %v798_v54, %v366_v57 }
 0x1b1   :  { %v368_v63 = vmul.f32 0.5, %v367_v60  ;;  %v354_v0 = vpop.xlane.xlu1 %353 }
 0x1b2   :  { %v359_v9 = vmul.f32 %v354_v0, %v1000_v48 }
 0x1b3   :  { %v369_v12 = vsub.f32 1.5, %v368_v63 }
 0x1b4   :  { %v800_v19 = vpop.eup %799  ;;  %v363_v21 = vadd.f32 1e-05, %v359_v9 }
 0x1b5   :  { %v370_v23 = vmul.f32 %v798_v54, %v369_v12  ;;  %v376_v25 = vmul.f32 %v800_v19, %v362_v55  ;;  %vm382_vm10 = vweird.f32 %v800_v19 }
 0x1b6   :  { %801 = vrsqrt.f32 %v363_v21  ;;  %vm383_vm12 = vmor %vm381_vm11, %vm382_vm10  ;;  %vm391_vm14 = vweird.f32 %v363_v21 }
 0x1b7   :  { %v374_v30 = vsel %vm373_vm9, %v798_v54, %v370_v23  ;;  %v377_v31 = vmul.f32 %v800_v19, %v376_v25 }
 0x1b8   :  { %v405_v34 = vmul.f32 %v374_v30, %v1006_v52 }
 0x1b9   :  { %v378_v36 = vmul.f32 0.5, %v377_v31  ;;  %v356_v37 = vpop.xlane.xlu2 %355  ;;  %v792_v31 = vld [vmem:[#allocation7 + $0x3] ss:$0 sm:$0xff] }
 0x1ba   :  { %v360_v38 = vmul.f32 %v356_v37, %v1000_v48  ;;  %v410_v39 = vmul.f32 %v1073_v28, %v405_v34 }
 0x1bb   :  { %v379_v40 = vsub.f32 1.5, %v378_v36 }
 0x1bc   :  { %v802_v41 = vpop.eup %801  ;;  %v364_v42 = vadd.f32 1e-05, %v360_v38  ;;  %v415_v43 = vadd.f32 %v1076_v35, %v410_v39 }
 0x1bd   :  { %v380_v44 = vmul.f32 %v800_v19, %v379_v40  ;;  %v386_v52 = vmul.f32 %v802_v41, %v363_v21  ;;  %vm392_vm13 = vweird.f32 %v802_v41 }
 0x1be   :  { %803 = vrsqrt.f32 %v364_v42  ;;  %v1083_v45 = vmax.f32 %v415_v43, 0.0  ;;  %vm393_vm15 = vmor %vm391_vm14, %vm392_vm13  ;;  %vm401_vm7 = vweird.f32 %v364_v42 }
 0x1bf   :  { %v384_v46 = vsel %vm383_vm12, %v800_v19, %v380_v44  ;;  %v387_v47 = vmul.f32 %v802_v41, %v386_v52 }
 0x1c0   :  { %v406_v50 = vmul.f32 %v384_v46, %v1011_v56  ;;  %559 = vmatmul.f32.vlgmr.msrb.gmra.mxu0 %v1083_v45  ;;  %v496_v60 = vrot.slane %v1083_v45, 1  ;;  %v481_v20 = vrot.slane %v1083_v45, 7 }
 0x1c1   :  { %v388_v49 = vmul.f32 0.5, %v387_v47 }
 0x1c2   :  { %v411_v51 = vmul.f32 %v1073_v28, %v406_v50 }
 0x1c3   :  { %v389_v53 = vsub.f32 1.5, %v388_v49 }
 0x1c4   :  { %v804_v4 = vpop.eup %803  ;;  %v416_v54 = vadd.f32 %v1076_v35, %v411_v51 }
 0x1c5   :  { %v390_v55 = vmul.f32 %v802_v41, %v389_v53  ;;  %v396_v57 = vmul.f32 %v804_v4, %v364_v42  ;;  %vm402_vm6 = vweird.f32 %v804_v4 }
 0x1c6   :  { %v420_v56 = vmax.f32 %v416_v54, 0.0  ;;  %vm403_vm8 = vmor %vm401_vm7, %vm402_vm6 }
 0x1c7   :  { %v394_v5 = vsel %vm393_vm15, %v802_v41, %v390_v55  ;;  %v397_v58 = vmul.f32 %v804_v4, %v396_v57  ;;  %vm723_vm15 = vcmask 253952  }
 0x1c8   :  { %v407_v6 = vmul.f32 %v394_v5, %v1016_v61  ;;  %v497_v62 = vrot.slane %v420_v56, 1  ;;  %v482_v24 = vrot.slane %v420_v56, 7 }
 0x1c9   :  { %v398_v7 = vmul.f32 0.5, %v397_v58 }
 0x1ca   :  { %v412_v63 = vmul.f32 %v1073_v28, %v407_v6  ;;  %v498_v0 = vsel %vm208_vm0, %v496_v60, %v497_v62  ;;  %v483_v26 = vsel %vm184_vm1, %v481_v20, %v482_v24 }
 0x1cb   :  { %v399_v2 = vsub.f32 1.5, %v398_v7  ;;  %588 = vmatmul.f32.vlgmr.msrb.gmra.mxu1 %v498_v0 }
 0x1cc   :  { %v417_v8 = vadd.f32 %v1076_v35, %v412_v63 }
 0x1cd   :  { %v400_v10 = vmul.f32 %v804_v4, %v399_v2 }
 0x1ce   :  { %v421_v61 = vmax.f32 %v417_v8, 0.0 }
 0x1cf   :  { %v404_v9 = vsel %vm403_vm8, %v804_v4, %v400_v10 }
 0x1d0   :  { %v408_v13 = vmul.f32 %v404_v9, %v1021_v1  ;;  %v499_v12 = vrot.slane %v421_v61, 1  ;;  %v484_v29 = vrot.slane %v421_v61, 7 }
 0x1d2   :  { %v413_v14 = vmul.f32 %v1073_v28, %v408_v13  ;;  %v500_v16 = vsel %vm208_vm0, %v497_v62, %v499_v12  ;;  %v485_v32 = vsel %vm184_vm1, %v482_v24, %v484_v29 }
 0x1d3   :  { %756 = vmatmul.msk.f32.gmra.mxu1 %vm973_vm3, %v500_v16 }
 0x1d4   :  { %v418_v18 = vadd.f32 %v1076_v35, %v413_v14 }
 0x1d6   :  { %v422_v17 = vmax.f32 %v418_v18, 0.0 }
 0x1d8   :  { %v476_v1 = vrot.slane %v422_v17, 7  ;;  %v501_v22 = vrot.slane %v422_v17, 1 }
 0x1da   :  { %v491_v19 = vsel %vm184_vm1, %v476_v1, %v481_v20  ;;  %v502_v3 = vsel %vm208_vm0, %v499_v12, %v501_v22  ;;  %v508_v21 = vsel %vm208_vm0, %v501_v22, %v496_v60  ;;  %v486_v23 = vsel %vm184_vm1, %v484_v29, %v476_v1 }
 0x1db   :  { %752 = vmatmul.msk.f32.vlgmr.msra.gmra.mxu3 %vm964_vm2, %v491_v19  ;;  %594 = vmatmul.f32.gmra.mxu1 %v502_v3 }
 0x1e3   :  { %533 = vmatmul.f32.gmra.mxu3 %v483_v26  ;;  %758 = vmatmul.msk.f32.gmra.mxu1 %vm992_vm5, %v508_v21 }
 0x1eb   :  { %754 = vmatmul.msk.f32.gmra.mxu3 %vm984_vm4, %v485_v32 }
 0x1f3   :  { %539 = vmatmul.f32.gmra.mxu3 %v486_v23 }
 0x1fb   :  { %562 = vmatmul.f32.vlgmr.msrb.gmra.mxu3 %v420_v56 }
 0x203   :  { %565 = vmatmul.f32.gmra.mxu3 %v421_v61 }
 0x20b   :  { %568 = vmatmul.f32.gmra.mxu3 %v422_v17 }
 0x23d   :  { %v560_v46 = vpop.f32.mrf.mxu0 }
 0x248   :  { %v589_v28 = vpop.f32.mrf.mxu1 }
 0x250   :  { %v592_v15 = vpop.f32.mrf.mxu1 }
 0x258   :  { %v595_v37 = vpop.f32.mrf.mxu1 }
 0x25e   :  { %v531_v59 = vpop.f32.mrf.mxu3 }
 0x25f   :  { %v532_v52 = vadd.f32 %v792_v31, %v531_v59 }
 0x260   :  { %v598_v44 = vpop.f32.mrf.mxu1 }
 0x261   :  { %v561_v47 = vadd.f32 %v560_v46, %v532_v52  ;;  %v794_v52 = vld [vmem:[#allocation7 + $0x5] ss:$0 sm:$0xff] }
 0x263   :  { %v590_v50 = vadd.f32 %v589_v28, %v561_v47 }
 0x266   :  { %v534_v25 = vpop.f32.mrf.mxu3 }
 0x267   :  { %v535_v33 = vadd.f32 %v792_v31, %v534_v25 }
 0x26e   :  { %v537_v27 = vpop.f32.mrf.mxu3 }
 0x26f   :  { %v538_v11 = vadd.f32 %v792_v31, %v537_v27 }
 0x276   :  { %v540_v30 = vpop.f32.mrf.mxu3 }
 0x277   :  { %v541_v41 = vadd.f32 %v792_v31, %v540_v30  ;;  %v696_v30 = vld [vmem:[#allocation7 + $0x7] sm:$0x1]  ;;  %v921_v31 = vmov 0  }
 0x278   :  { %787 = vset.pattern.permute.xlu1 %v921_v31  ;;  %788 = vset.pattern.permute.xlu0 %v921_v31 }
 0x27e   :  { %v563_v34 = vpop.f32.mrf.mxu3 }
 0x27f   :  { %v564_v35 = vadd.f32 %v563_v34, %v535_v33 }
 0x281   :  { %v593_v36 = vadd.f32 %v592_v15, %v564_v35 }
 0x283   :  { %603 = vadd.xlane.f32.xlu1 %v593_v36 }
 0x286   :  { %v566_v38 = vpop.f32.mrf.mxu3 }
 0x287   :  { %v567_v39 = vadd.f32 %v566_v38, %v538_v11 }
 0x289   :  { %v596_v40 = vadd.f32 %v595_v37, %v567_v39 }
 0x28b   :  { %605 = vadd.xlane.f32.xlu0 %v596_v40 }
 0x28e   :  { %v569_v42 = vpop.f32.mrf.mxu3 }
 0x28f   :  { %v570_v43 = vadd.f32 %v569_v42, %v541_v41  ;;  %v793_v42 = vld [vmem:[#allocation7 + $0x4] ss:$0 sm:$0xff] }
 0x291   :  { %v599_v45 = vadd.f32 %v598_v44, %v570_v43 }
 0x293   :  { %607 = vadd.xlane.f32.xlu2 %v599_v45 }
 0x29b   :  { %601 = vadd.xlane.f32.xlu2 %v590_v50 }
 0x2f6   :  { %v604_v49 = vpop.xlane.xlu1 %603 }
 0x2f7   :  { %v610_v51 = vmul.f32 %v604_v49, %v1000_v48 }
 0x2f9   :  { %v1128_v53 = vsub.f32 %v593_v36, %v610_v51 }
 0x2fb   :  { %v618_v4 = vmul.f32 %v1128_v53, %v1128_v53 }
 0x2fd   :  { %623 = vadd.xlane.f32.xlu2 %v618_v4 }
 0x2fe   :  { %v606_v54 = vpop.xlane.xlu0 %605 }
 0x2ff   :  { %v611_v55 = vmul.f32 %v606_v54, %v1000_v48 }
 0x301   :  { %v1133_v57 = vsub.f32 %v596_v40, %v611_v55 }
 0x303   :  { %v619_v56 = vmul.f32 %v1133_v57, %v1133_v57 }
 0x305   :  { %625 = vadd.xlane.f32.xlu1 %v619_v56 }
 0x306   :  { %v608_v5 = vpop.xlane.xlu2 %607 }
 0x307   :  { %v612_v58 = vmul.f32 %v608_v5, %v1000_v48 }
 0x309   :  { %v1138_v6 = vsub.f32 %v599_v45, %v612_v58 }
 0x30b   :  { %v620_v60 = vmul.f32 %v1138_v6, %v1138_v6 }
 0x30d   :  { %627 = vadd.xlane.f32.xlu0 %v620_v60 }
 0x30e   :  { %v602_v62 = vpop.xlane.xlu2 %601 }
 0x30f   :  { %v609_v7 = vmul.f32 %v602_v62, %v1000_v48  ;;  %v695_v62 = vld [vmem:[#allocation7 + $0x6] sm:$0x1] }
 0x311   :  { %v1143_v63 = vsub.f32 %v590_v50, %v609_v7 }
 0x313   :  { %v617_v0 = vmul.f32 %v1143_v63, %v1143_v63 }
 0x315   :  { %621 = vadd.xlane.f32.xlu0 %v617_v0 }
 0x31e   :  { %699 = vperm.xlu1 %787, %v696_v30  }
 0x370   :  { %v624_v2 = vpop.xlane.xlu2 %623 }
 0x371   :  { %v630_v8 = vmul.f32 %v624_v2, %v1000_v48 }
 0x373   :  { %v634_v10 = vadd.f32 1e-05, %v630_v8 }
 0x375   :  { %805 = vrsqrt.f32 %v634_v10  ;;  %vm653_vm5 = vweird.f32 %v634_v10 }
 0x378   :  { %v626_v61 = vpop.xlane.xlu1 %625 }
 0x379   :  { %v631_v9 = vmul.f32 %v626_v61, %v1000_v48 }
 0x37b   :  { %v635_v13 = vadd.f32 1e-05, %v631_v9  ;;  %v806_v12 = vpop.eup %805 }
 0x37c   :  { %v648_v16 = vmul.f32 %v806_v12, %v634_v10  ;;  %vm654_vm2 = vweird.f32 %v806_v12 }
 0x37d   :  { %807 = vrsqrt.f32 %v635_v13  ;;  %vm663_vm1 = vweird.f32 %v635_v13  ;;  %vm655_vm9 = vmor %vm653_vm5, %vm654_vm2 }
 0x37e   :  { %v649_v22 = vmul.f32 %v806_v12, %v648_v16 }
 0x380   :  { %v628_v14 = vpop.xlane.xlu0 %627  ;;  %v650_v26 = vmul.f32 0.5, %v649_v22 }
 0x381   :  { %v632_v18 = vmul.f32 %v628_v14, %v1000_v48 }
 0x382   :  { %v651_v25 = vsub.f32 1.5, %v650_v26 }
 0x383   :  { %v808_v17 = vpop.eup %807  ;;  %v636_v1 = vadd.f32 1e-05, %v632_v18 }
 0x384   :  { %v658_v20 = vmul.f32 %v808_v17, %v635_v13  ;;  %vm664_vm0 = vweird.f32 %v808_v17  ;;  %v652_v33 = vmul.f32 %v806_v12, %v651_v25 }
 0x385   :  { %809 = vrsqrt.f32 %v636_v1  ;;  %vm665_vm3 = vmor %vm663_vm1, %vm664_vm0  ;;  %vm673_vm10 = vweird.f32 %v636_v1 }
 0x386   :  { %v659_v19 = vmul.f32 %v808_v17, %v658_v20  ;;  %v656_v40 = vsel %vm655_vm9, %v806_v12, %v652_v33 }
 0x387   :  { %v678_v46 = vmul.f32 %v656_v40, %v1128_v53 }
 0x388   :  { %v660_v3 = vmul.f32 0.5, %v659_v19  ;;  %v622_v24 = vpop.xlane.xlu0 %621 }
 0x389   :  { %v629_v21 = vmul.f32 %v622_v24, %v1000_v48  ;;  %v683_v54 = vmul.f32 %v793_v42, %v678_v46 }
 0x38a   :  { %v661_v29 = vsub.f32 1.5, %v660_v3 }
 0x38b   :  { %v810_v32 = vpop.eup %809  ;;  %v633_v23 = vadd.f32 1e-05, %v629_v21  ;;  %v688_v5 = vadd.f32 %v794_v52, %v683_v54 }
 0x38c   :  { %v668_v59 = vmul.f32 %v810_v32, %v636_v1  ;;  %v662_v27 = vmul.f32 %v808_v17, %v661_v29  ;;  %vm674_vm4 = vweird.f32 %v810_v32 }
 0x38d   :  { %811 = vrsqrt.f32 %v633_v23  ;;  %vm675_vm11 = vmor %vm673_vm10, %vm674_vm4  ;;  %vm643_vm13 = vweird.f32 %v633_v23 }
 0x38e   :  { %v669_v28 = vmul.f32 %v810_v32, %v668_v59  ;;  %v666_v34 = vsel %vm665_vm3, %v808_v17, %v662_v27 }
 0x38f   :  { %v679_v37 = vmul.f32 %v666_v34, %v1133_v57 }
 0x390   :  { %v670_v15 = vmul.f32 0.5, %v669_v28  ;;  %v700_v7 = vpop.permute.xlu1 %699 }
 0x391   :  { %v684_v45 = vmul.f32 %v793_v42, %v679_v37 }
 0x392   :  { %v671_v48 = vsub.f32 1.5, %v670_v15 }
 0x393   :  { %v812_v35 = vpop.eup %811  ;;  %v689_v4 = vadd.f32 %v794_v52, %v684_v45 }
 0x394   :  { %v672_v36 = vmul.f32 %v810_v32, %v671_v48  ;;  %v638_v11 = vmul.f32 %v812_v35, %v633_v23  ;;  %vm644_vm12 = vweird.f32 %v812_v35 }
 0x395   :  { %vm645_vm14 = vmor %vm643_vm13, %vm644_vm12  ;;  %v693_v56 = vmax.f32 %v689_v4, 0.0 }
 0x396   :  { %v639_v38 = vmul.f32 %v812_v35, %v638_v11  ;;  %v676_v39 = vsel %vm675_vm11, %v810_v32, %v672_v36 }
 0x397   :  { %v680_v41 = vmul.f32 %v676_v39, %v1138_v6  ;;  %v692_v6 = vmax.f32 %v688_v5, 0.0 }
 0x398   :  { %v640_v43 = vmul.f32 0.5, %v639_v38 }
 0x399   :  { %v685_v44 = vmul.f32 %v793_v42, %v680_v41 }
 0x39a   :  { %v641_v47 = vsub.f32 1.5, %v640_v43 }
 0x39b   :  { %v690_v50 = vadd.f32 %v794_v52, %v685_v44 }
 0x39c   :  { %v642_v49 = vmul.f32 %v812_v35, %v641_v47 }
 0x39d   :  { %v694_v51 = vmax.f32 %v690_v50, 0.0 }
 0x39e   :  { %v646_v55 = vsel %vm645_vm14, %v812_v35, %v642_v49 }
 0x39f   :  { %714 = vmatpush.xpose.msrb.mxu2 %v694_v51  ;;  %v677_v57 = vmul.f32 %v646_v55, %v1143_v63 }
 0x3a1   :  { %v682_v58 = vmul.f32 %v793_v42, %v677_v57 }
 0x3a3   :  { %715 = vmatpush.xpose.msrb.mxu2 %v693_v56  ;;  %v687_v60 = vadd.f32 %v794_v52, %v682_v58 }
 0x3a5   :  { %v691_v53 = vmax.f32 %v687_v60, 0.0 }
 0x3a7   :  { %716 = vmatpush.xpose.msrb.mxu2 %v692_v6 }
 0x3ab   :  { %717 = vmatpush.xpose.msrb.mxu2 %v691_v53 }
 0x3ae   :  { %718 = vmatmul.f32.vlgmr.msrb.gmra.mxu2 %v695_v62 }
 0x431   :  { %v719_v0 = vpop.f32.mrf.mxu2 }
 0x432   :  { %v720_v63 = vadd.f32 %v719_v0, %v700_v7 }
 0x434   :  { %v722_v2 = vmax.f32 %v720_v63, 0.0 }
 0x436   :  { %724 = vst.msk [vmem:[#allocation8] sm:$0x1] %vm723_vm15, %v722_v2 }
 0x437   :  { %735 = dma.vmem_to_hbm [thread:$0]  %s731_s2, 16, %s733_s30, [#allocation4]  }
 0x438   :  { %913 = dma.done.wait [#allocation4], 16  }
 0x439   :  { %914 = vsyncadd [#allocation4], 4294967280 }
 0x43a   :  { %740 = vsyncpa [#allocation3], 1 }
 0x43b   :  { %741 = vsyncpa [#allocation6], 1 }
 0x43c   :  { %742 = vsyncpa [#allocation4], 1 }

</bundles_post_ra>
